<compile_context>
chip_gen: v7x
topology: tpu7x:2x2x1
jax: 0.10.0
libtpu: 0.0.40
codegen_flags: <defaults>
</compile_context>

<pallas_src>
import jax
import jax.numpy as jnp
from jax.experimental import pallas as pl
from jax.experimental.pallas import tpu as pltpu

_LANE = 128
_MAX_TF = 2048          # cap on the feature-axis tile (multiple of 128)
_MIN_GRID_STEPS = 8     # min row-blocks: enables pipelining + 2-TC sharding


def _sublane_quantum(itemsize):
    # Packed-sublane quantum: f32 -> 8, bf16/f16 -> 16, int8/fp8 -> 32.
    return max(8, 32 // max(1, itemsize))


def _tpu_budgets():
    """(tile_byte_budget, vmem_limit_bytes, pallas_min_bytes), generation-gated."""
    try:
        info = pltpu.get_tpu_info()
        vmem_cap = int(getattr(info, "vmem_capacity_bytes", 64 << 20))
    except Exception:
        vmem_cap = 64 << 20  # assume the most constrained part (v7x)
    if vmem_cap >= 100 * 1024 * 1024:
        # v5e / v6e: 128 MiB VMEM -> bigger blocks amortize per-step overhead.
        return 8 << 20, 80 << 20, 1 << 20
    else:
        # v7x: 64 MiB VMEM -> keep 2 arrays x 2 buffers x block well under it.
        return 4 << 20, 40 << 20, 2 << 20


def _choose_tiles(M, F, itemsize, tile_budget):
    """Pick (tm, tf): lane-dense, quantum-aligned-or-full-dim, budget-bounded,
    with enough row blocks to keep the pipeline (and both v7x cores) busy."""
    sub_q = _sublane_quantum(itemsize)

    # Feature tile: full F when modest (full-dim blocks are always legal);
    # otherwise cap at a multiple-of-128 width, cdiv handles the ragged tail.
    tf = F if F <= _MAX_TF else _MAX_TF

    if M <= sub_q:
        return M, tf  # full row dim -> always a legal block shape

    # Largest quantum-multiple row count that fits the per-block byte budget.
    max_rows = max(sub_q, tile_budget // max(1, tf * itemsize))
    max_rows = (max_rows // sub_q) * sub_q

    # ...but small enough that the row axis yields >= _MIN_GRID_STEPS blocks.
    target = -(-M // _MIN_GRID_STEPS)                       # cdiv
    target = ((target + sub_q - 1) // sub_q) * sub_q        # round up to quantum
    tm = max(sub_q, min(max_rows, target))
    if tm >= M:
        tm = M
    return tm, tf


def _scale_kernel(inv_ref, x_ref, o_ref):
    # inv_ref: (1, 1) f32 reciprocal of the weight, in SMEM.
    # x_ref / o_ref: (tm, tf) tile in VMEM.
    inv = inv_ref[0, 0].astype(x_ref.dtype)        # scalar cast, stays in x dtype
    o_ref[...] = (x_ref[...] * inv).astype(o_ref.dtype)   # single VALU multiply


def linear_forward(x, weight, *, force_pallas=False, donate_input=False):
    """Pallas equivalent of LinearFunction.forward(input, weight, bias=None)."""
    orig_shape = x.shape
    itemsize = jnp.dtype(x.dtype).itemsize
    tile_budget, vmem_limit, min_bytes = _tpu_budgets()

    # Reciprocal hoisted out of the kernel: one f32 scalar divide, total.
    inv_w = (1.0 / weight.astype(jnp.float32)).reshape(1, 1)

    # Collapse to 2D (elementwise op; leading dims are irrelevant).
    if x.ndim == 0:
        return x * inv_w[0, 0].astype(x.dtype)
    x2 = x.reshape(1, -1) if x.ndim == 1 else x.reshape(-1, x.shape[-1])
    M, F = x2.shape
    total = M * F

    # Tiny inputs: kernel-launch + pipeline ramp dwarfs the work.
    if not force_pallas and total * itemsize < min_bytes:
        return x * inv_w[0, 0].astype(x.dtype)

    # Lane-dense reshape for narrow / unaligned feature dims: masked partial
    # stores (last dim < 128) are the single biggest streaming-store penalty.
    if F % _LANE != 0:
        for W in (2048, 1024, 512, 256, 128):
            if total % W == 0:
                M, F = total // W, W
                x2 = x2.reshape(M, F)
                break
        # else: keep (M, F); full-dim feature block is legal, tail stores masked.

    tm, tf = _choose_tiles(M, F, itemsize, tile_budget)
    grid = (pl.cdiv(M, tm), pl.cdiv(F, tf))

    extra = {}
    if donate_input:
        # Alias x (operand index 1) to the output: halves HBM footprint and
        # avoids a defensive copy when the caller can donate x.
        extra["input_output_aliases"] = {1: 0}

    out2 = pl.pallas_call(
        _scale_kernel,
        out_shape=jax.ShapeDtypeStruct((M, F), x.dtype),
        grid=grid,
        in_specs=[
            # (1,1) f32 reciprocal, untiled, lives in SMEM
            pl.BlockSpec(memory_space=pltpu.MemorySpace.SMEM),
            # (tm, tf) input tile in VMEM
            pl.BlockSpec((tm, tf), lambda i, j: (i, j)),
        ],
        out_specs=pl.BlockSpec((tm, tf), lambda i, j: (i, j)),
        compiler_params=pltpu.CompilerParams(
            dimension_semantics=("parallel", "parallel"),
            vmem_limit_bytes=vmem_limit,
        ),
        **extra,
    )(inv_w, x2)

    return out2.reshape(orig_shape)


if __name__ == "__main__":
    key = jax.random.PRNGKey(0)
    k_w, k_x, k_u, k_b = jax.random.split(key, 4)

    # Parameter init mirroring the module: weight = N(0, 0.01) + 1.0, shape (1, 1)
    weight = jax.random.normal(k_w, (1, 1), dtype=jnp.float32) * 0.01 + 1.0

    # 1) Lane-aligned small input (batch=8, features=128), f32.
    x = jax.random.normal(k_x, (8, 128), dtype=jnp.float32)
    out = jax.block_until_ready(linear_forward(x, weight, force_pallas=True))
    ref = x / weight
    assert out.shape == x.shape
    assert jnp.allclose(out, ref, rtol=1e-5, atol=1e-6)

    # 2) Unaligned feature dim (16, 96): exercises the lane-dense flatten path.
    x_u = jax.random.normal(k_u, (16, 96), dtype=jnp.float32)
    out_u = jax.block_until_ready(linear_forward(x_u, weight, force_pallas=True))
    assert out_u.shape == x_u.shape
    assert jnp.allclose(out_u, x_u / weight, rtol=1e-5, atol=1e-6)

    # 3) bf16 input: exercises the in-dtype multiply + cast-on-store path.
    x_b = jax.random.normal(k_b, (32, 256), dtype=jnp.bfloat16)
    out_b = jax.block_until_ready(linear_forward(x_b, weight, force_pallas=True))
    ref_b = (x_b.astype(jnp.float32) / weight).astype(jnp.bfloat16)
    assert out_b.dtype == jnp.bfloat16 and out_b.shape == x_b.shape
    assert jnp.allclose(out_b.astype(jnp.float32), ref_b.astype(jnp.float32),
                        rtol=2e-2, atol=2e-2)

    print("KERNEL_OK")
</pallas_src>

<mosaic_0001>
module attributes {stable_mosaic.version = 11 : i64} {
  func.func @_scale_kernel(%arg0: i32, %arg1: i32, %arg2: memref<1x1xf32, #tpu.memory_space<smem>>, %arg3: memref<8x128xf32, #tpu.memory_space<vmem>>, %arg4: memref<8x128xf32, #tpu.memory_space<vmem>>) attributes {dimension_semantics = [#tpu.dimension_semantics<parallel>, #tpu.dimension_semantics<parallel>], iteration_bounds = array<i64: 1, 1>, scalar_prefetch = 0 : i64, scratch_operands = 0 : i64, tpu.core_type = #tpu.core_type<tc>, window_params = [{transform_indices = @transform_0, window_bounds = array<i64: 1, 1>}, {transform_indices = @transform_1, window_bounds = array<i64: 8, 128>}, {transform_indices = @transform_2, window_bounds = array<i64: 8, 128>}]} {
    %c0 = arith.constant 0 : index
    %c0_0 = arith.constant 0 : index
    %0 = memref.load %arg2[%c0, %c0_0] : memref<1x1xf32, #tpu.memory_space<smem>>
    %c0_1 = arith.constant 0 : index
    %c0_2 = arith.constant 0 : index
    %1 = vector.load %arg3[%c0_1, %c0_2] : memref<8x128xf32, #tpu.memory_space<vmem>>, vector<8x128xf32>
    %2 = vector.broadcast %0 : f32 to vector<8x128xf32>
    %3 = arith.mulf %1, %2 : vector<8x128xf32>
    %c0_3 = arith.constant 0 : index
    %c0_4 = arith.constant 0 : index
    %4 = vector.load %arg4[%c0_3, %c0_4] : memref<8x128xf32, #tpu.memory_space<vmem>>, vector<8x128xf32>
    tpu.vector_store %arg4[%c0_3, %c0_4], %3 {strides = array<i32>} : memref<8x128xf32, #tpu.memory_space<vmem>>, vector<8x128xf32>,
    return
  }
  func.func @transform_0(%arg0: i32, %arg1: i32) -> (i32, i32) {
    %c0_i32 = arith.constant 0 : i32
    %c0_i32_0 = arith.constant 0 : i32
    %c0_i32_1 = arith.constant 0 : i32
    return %c0_i32, %c0_i32_0 : i32, i32
  }
  func.func @transform_1(%arg0: i32, %arg1: i32) -> (i32, i32) {
    %c0_i32 = arith.constant 0 : i32
    return %arg0, %arg1 : i32, i32
  }
  func.func @transform_2(%arg0: i32, %arg1: i32) -> (i32, i32) {
    %c0_i32 = arith.constant 0 : i32
    return %arg0, %arg1 : i32, i32
  }
}

</mosaic_0001>

<bundles_post_ra>
// kernel: tpu_custom_call.1
= control target key start
LH: loop header
LB: loop body
LE: loop exit
PB: predicated region body
PF: predicated region fallthrough
CT: control target
= control target key end

     0   :  { %8 = vsyncpa [#allocation4], 0  ;;  %s139_s0 = inlined_call_operand.<no memory space> [shape: f32[1,1], index: 0, kind: input, shape index: {}]   ;;  %s140_s1 = inlined_call_operand.hbm [shape: f32[8,128], index: 1, kind: input, shape index: {}]   ;;  %s141_s2 = inlined_call_operand.hbm [shape: f32[8,128], index: 2, kind: output, shape index: {}]  }
   0x1   :  { %9 = vsyncpa [#allocation5], 0  ;;  %s95_s9 = smov [#allocation3]   ;;  %s47_s13 = scalar_lea.hbm %s140_s1, 128 }
   0x2   :  { %s18_s10 = sshll.u32 %s95_s9, 4  ;;  %p48_p0 = scmp.ne.s32.totalorder %s140_s1, %s47_s13  ;;  %s19_s10 = int_to_ptr.vmem [resolvable:$true] %s18_s10 }
   0x3   :  { %p51_p1 = scmp.lt.u32.totalorder %s47_s13, %s140_s1 }
   0x5   :  { %p53_p2 = pnand %p51_p1, %p48_p0 }
   0x7   :  { %56 = shalt.err (!%p53_p2)
}
   0x8   :  { %s57_s18 = scalar_lea.vmem %s19_s10, 128  ;;  %p62_p4 = scmp.lt.s32.totalorder %s19_s10, %s19_s10 }
   0x9   :  { %p58_p3 = scmp.ne.s32.totalorder %s19_s10, %s57_s18  ;;  %p63_p5 = scmp.lt.s32.totalorder %s57_s18, %s57_s18 }
   0xb   :  { %p64_p6 = por %p63_p5, %p62_p4 }
   0xd   :  { %p65_p7 = pnand %p64_p6, %p58_p3 }
   0xf   :  { %68 = shalt.err (!%p65_p7)
}
  0x10   :  { %21 = dma.hbm_to_vmem [thread:$0]  %s140_s1, 128, %s19_s10, [#allocation4]  }
  0x11   :  { %91 = dma.done.wait [#allocation4], 128  }
  0x12   :  { %92 = vsyncadd [#allocation4], 4294967168  ;;  %v27_v0 = vstv %s139_s0  ;;  %s96_s23 = smov [#allocation6]   ;;  %v26_v1 = vld [vmem:[#allocation3] sm:$0xff] }
  0x13   :  { %s36_s24 = sshll.u32 %s96_s23, 4  ;;  %v28_v2 = vmul.f32 %v27_v0, %v26_v1  ;;  %s37_s24 = int_to_ptr.vmem [resolvable:$true] %s36_s24 }
  0x14   :  { %s69_s25 = scalar_lea.vmem %s37_s24, 128  ;;  %p74_p9 = scmp.lt.s32.totalorder %s37_s24, %s37_s24 }
  0x15   :  { %29 = vst [vmem:[#allocation6] sm:$0xff] %v28_v2  ;;  %p70_p8 = scmp.ne.s32.totalorder %s37_s24, %s69_s25  ;;  %p75_p10 = scmp.lt.s32.totalorder %s69_s25, %s69_s25 }
  0x17   :  { %p76_p11 = por %p75_p10, %p74_p9 }
  0x19   :  { %p77_p12 = pnand %p76_p11, %p70_p8 }
  0x1b   :  { %80 = shalt.err (!%p77_p12)
}
  0x1c   :  { %s81_s27 = scalar_lea.hbm %s141_s2, 128 }
  0x1d   :  { %p82_p13 = scmp.ne.s32.totalorder %s141_s2, %s81_s27  ;;  %p85_p0 = scmp.lt.u32.totalorder %s81_s27, %s141_s2 }
  0x1f   :  { %p87_p1 = pnand %p85_p0, %p82_p13 }
  0x21   :  { %90 = shalt.err (!%p87_p1)
}
  0x22   :  { %39 = dma.vmem_to_hbm [thread:$0]  %s37_s24, 128, %s141_s2, [#allocation5]  }
  0x23   :  { %93 = dma.done.wait [#allocation5], 128  }
  0x24   :  { %94 = vsyncadd [#allocation5], 4294967168 }
  0x25   :  { %43 = vsyncpa [#allocation4], 1 }
  0x26   :  { %44 = vsyncpa [#allocation5], 1 }

</bundles_post_ra>
